<compile_context>
chip_gen: v5e
topology: v5e:2x2
jax: 0.10.0
libtpu: 0.0.40
codegen_flags: <defaults>
</compile_context>

<pallas_src>
import math
import numpy as np

import jax
import jax.numpy as jnp
from jax.experimental import pallas as pl
from jax.experimental.pallas import tpu as pltpu


# ----------------------------- config (small) ------------------------------
HIDDEN_SIZE = 32
NUM_HEADS = 4
NUM_KV_HEADS = 2
HEAD_DIM = 8
PARTIAL_ROTARY_FACTOR = 0.5
ROPE_THETA = 10000.0
BATCH = 2
SEQ = 8

ROT_DIM = int(HEAD_DIM * PARTIAL_ROTARY_FACTOR)
NUM_KV_GROUPS = NUM_HEADS // NUM_KV_HEADS
HD = NUM_HEADS * HEAD_DIM          # 32
KVD = NUM_KV_HEADS * HEAD_DIM      # 16
QKV_OUT = HD + 2 * KVD             # 64


# ------------------------------ Pallas kernel -------------------------------
def _fused_attention_kernel(x_ref, wqkv_ref, wo_ref, rq_ref, rk_ref,
                            cosq_ref, sinq_ref, cosk_ref, sink_ref, o_ref):
    """One grid point = one batch element. Everything stays in VMEM."""
    x = x_ref[0]                                   # (S, HIDDEN)
    S = x.shape[0]

    # Fused q/k/v projection: single MXU matmul.
    qkv = jnp.dot(x, wqkv_ref[...], preferred_element_type=jnp.float32)  # (S, QKV_OUT)
    q = qkv[:, :HD]                                # (S, H*D)
    k = qkv[:, HD:HD + KVD]                        # (S, KV*D)
    v = qkv[:, HD + KVD:]                          # (S, KV*D)

    # Partial rotary embedding. rotate_half == matmul with a constant
    # block-diagonal +/-1 matrix; cos/sin masks are 1/0 on the pass-through
    # dims. The 1/sqrt(D) attention scale is pre-folded into cosq/sinq.
    q = q * cosq_ref[0] + jnp.dot(q, rq_ref[...],
                                  preferred_element_type=jnp.float32) * sinq_ref[0]
    k = k * cosk_ref[0] + jnp.dot(k, rk_ref[...],
                                  preferred_element_type=jnp.float32) * sink_ref[0]

    # Causal mask (shared across heads).
    row = jax.lax.broadcasted_iota(jnp.int32, (S, S), 0)
    col = jax.lax.broadcasted_iota(jnp.int32, (S, S), 1)
    causal = col <= row

    wo = wo_ref[...]                               # (H*D, HIDDEN)

    # Per-head attention (unrolled; H is tiny). GQA: head h uses KV head
    # h // NUM_KV_GROUPS directly -- no repeat_kv materialization.
    out = jnp.zeros((S, HIDDEN_SIZE), jnp.float32)
    for h in range(NUM_HEADS):
        kvh = h // NUM_KV_GROUPS
        qh = q[:, h * HEAD_DIM:(h + 1) * HEAD_DIM]           # (S, D)
        kh = k[:, kvh * HEAD_DIM:(kvh + 1) * HEAD_DIM]       # (S, D)
        vh = v[:, kvh * HEAD_DIM:(kvh + 1) * HEAD_DIM]       # (S, D)

        # q @ k^T via dot_general contracting on D (no explicit transpose).
        s = jax.lax.dot_general(qh, kh, (((1,), (1,)), ((), ())),
                                preferred_element_type=jnp.float32)  # (S, S)
        s = jnp.where(causal, s, -jnp.inf)

        m = jnp.max(s, axis=-1, keepdims=True)
        p = jnp.exp(s - m)
        l = jnp.sum(p, axis=-1, keepdims=True)
        p = p * pl.reciprocal(l, approx=False)     # exact to keep 1e-5 check

        oh = jnp.dot(p, vh, preferred_element_type=jnp.float32)       # (S, D)
        # Fused o_proj: accumulate this head's contribution into the
        # lane-dense (S, HIDDEN) output slab.
        out = out + jnp.dot(oh, wo[h * HEAD_DIM:(h + 1) * HEAD_DIM, :],
                            preferred_element_type=jnp.float32)

    o_ref[0] = out.astype(o_ref.dtype)
    # TODO(synk): attention_dropout (training) and padding attention_mask /
    # varlen flash-attention paths are not implemented (eval, no padding).


# ----------------------- constant / parameter preparation -------------------
def _rotation_matrix(n_heads):
    """Block-diagonal matrix R so that (x @ R) == rotate_half on the first
    ROT_DIM dims of every head (zeros on the pass-through dims)."""
    hd = n_heads * HEAD_DIM
    half = ROT_DIM // 2
    r = np.zeros((hd, hd), np.float32)
    for h in range(n_heads):
        base = h * HEAD_DIM
        for j in range(half):
            r[base + half + j, base + j] = -1.0    # out[:, j]      = -x[:, j+half]
            r[base + j, base + half + j] = 1.0     # out[:, j+half] =  x[:, j]
    return jnp.asarray(r)


def prepare_params(torch_params):
    """Fuse q/k/v weights and pre-transpose everything once (done at setup,
    not per forward call)."""
    wqkv = jnp.concatenate(
        [torch_params["q_proj"], torch_params["k_proj"], torch_params["v_proj"]],
        axis=0).T                                   # (HIDDEN, HD + 2*KVD)
    wo = torch_params["o_proj"].T                   # (HD, HIDDEN)
    return {
        "wqkv": wqkv,
        "wo": wo,
        "rot_q": _rotation_matrix(NUM_HEADS),
        "rot_k": _rotation_matrix(NUM_KV_HEADS),
    }


def _expand_rope(cos, sin, n_heads):
    """(B, S, ROT_DIM) cos/sin -> full-width (B, S, n_heads*HEAD_DIM) masks
    (cos=1 / sin=0 on the non-rotary pass-through dims)."""
    B, S, R = cos.shape
    pad = HEAD_DIM - R
    cos_h = jnp.concatenate([cos, jnp.ones((B, S, pad), cos.dtype)], axis=-1)
    sin_h = jnp.concatenate([sin, jnp.zeros((B, S, pad), sin.dtype)], axis=-1)
    return jnp.tile(cos_h, (1, 1, n_heads)), jnp.tile(sin_h, (1, 1, n_heads))


def rotary_embeddings(batch, seq, rot_dim, theta, dtype=jnp.float32):
    inv_freq = 1.0 / (theta ** (jnp.arange(0, rot_dim, 2, dtype=jnp.float32) / rot_dim))
    pos = jnp.arange(seq, dtype=jnp.float32)
    freqs = jnp.einsum("s,d->sd", pos, inv_freq)             # (S, rot_dim//2)
    emb = jnp.concatenate((freqs, freqs), axis=-1)           # (S, rot_dim)
    cos = jnp.cos(emb).astype(dtype)[None].repeat(batch, axis=0)
    sin = jnp.sin(emb).astype(dtype)[None].repeat(batch, axis=0)
    return cos, sin                                          # (B, S, rot_dim)


# ------------------------------- forward pass --------------------------------
def nemotron_flash_attention2_forward(hidden_states, position_embeddings, params):
    """NemotronFlashAttention2.forward (eval, no cache, attention_mask=None)."""
    B, S, _ = hidden_states.shape
    cos, sin = position_embeddings                           # (B, S, ROT_DIM)

    scale = 1.0 / math.sqrt(HEAD_DIM)
    cosq, sinq = _expand_rope(cos, sin, NUM_HEADS)           # (B, S, HD)
    cosk, sink = _expand_rope(cos, sin, NUM_KV_HEADS)        # (B, S, KVD)
    cosq = cosq * scale                                      # fold 1/sqrt(D) into q
    sinq = sinq * scale

    def block3(last):
        return pl.BlockSpec((1, S, last), lambda b: (b, 0, 0))

    def full2(r, c):
        return pl.BlockSpec((r, c), lambda b: (0, 0))

    return pl.pallas_call(
        _fused_attention_kernel,
        out_shape=jax.ShapeDtypeStruct((B, S, HIDDEN_SIZE), hidden_states.dtype),
        grid=(B,),
        in_specs=[
            block3(HIDDEN_SIZE),             # hidden_states
            full2(HIDDEN_SIZE, QKV_OUT),     # fused qkv weight (K, N)
            full2(HD, HIDDEN_SIZE),          # o_proj weight (K, N)
            full2(HD, HD),                   # rotate_half matrix for q
            full2(KVD, KVD),                 # rotate_half matrix for k
            block3(HD),                      # cos (q, scaled)
            block3(HD),                      # sin (q, scaled)
            block3(KVD),                     # cos (k)
            block3(KVD),                     # sin (k)
        ],
        out_specs=block3(HIDDEN_SIZE),
        compiler_params=pltpu.CompilerParams(dimension_semantics=("parallel",)),
    )(hidden_states, params["wqkv"], params["wo"], params["rot_q"], params["rot_k"],
      cosq, sinq, cosk, sink)


# ------------------------ pure-JAX reference (check) ------------------------
def rotate_half(x):
    x1 = x[..., : x.shape[-1] // 2]
    x2 = x[..., x.shape[-1] // 2:]
    return jnp.concatenate((-x2, x1), axis=-1)


def apply_rotary_pos_emb(q, k, cos, sin):
    cos = cos[:, None, :, :]
    sin = sin[:, None, :, :]
    rot_dim = cos.shape[-1]
    q_rot, q_pass = q[..., :rot_dim], q[..., rot_dim:]
    k_rot, k_pass = k[..., :rot_dim], k[..., rot_dim:]
    q_embed = q_rot * cos + rotate_half(q_rot) * sin
    k_embed = k_rot * cos + rotate_half(k_rot) * sin
    return (jnp.concatenate((q_embed, q_pass), axis=-1),
            jnp.concatenate((k_embed, k_pass), axis=-1))


def repeat_kv(x, n_rep):
    if n_rep == 1:
        return x
    B, KV, S, D = x.shape
    x = jnp.broadcast_to(x[:, :, None, :, :], (B, KV, n_rep, S, D))
    return x.reshape(B, KV * n_rep, S, D)


def reference_forward(hidden_states, position_embeddings, torch_params):
    B, S, _ = hidden_states.shape
    cos, sin = position_embeddings
    x2d = hidden_states.reshape(B * S, HIDDEN_SIZE)
    q = x2d @ torch_params["q_proj"].T
    k = x2d @ torch_params["k_proj"].T
    v = x2d @ torch_params["v_proj"].T
    q = q.reshape(B, S, NUM_HEADS, HEAD_DIM).transpose(0, 2, 1, 3)
    k = k.reshape(B, S, NUM_KV_HEADS, HEAD_DIM).transpose(0, 2, 1, 3)
    v = v.reshape(B, S, NUM_KV_HEADS, HEAD_DIM).transpose(0, 2, 1, 3)
    q, k = apply_rotary_pos_emb(q, k, cos, sin)
    k = repeat_kv(k, NUM_KV_GROUPS)
    v = repeat_kv(v, NUM_KV_GROUPS)
    s = jnp.einsum("bhqd,bhkd->bhqk", q, k) / math.sqrt(HEAD_DIM)
    mask = jnp.tril(jnp.ones((S, S), dtype=bool))
    s = jnp.where(mask[None, None], s, -jnp.inf)
    p = jax.nn.softmax(s.astype(jnp.float32), axis=-1).astype(q.dtype)
    o = jnp.einsum("bhqk,bhkd->bhqd", p, v)
    o = o.transpose(0, 2, 1, 3).reshape(B * S, NUM_HEADS * HEAD_DIM)
    return (o @ torch_params["o_proj"].T).reshape(B, S, HIDDEN_SIZE)


# ----------------------------------- main -----------------------------------
if __name__ == "__main__":
    key = jax.random.PRNGKey(0)
    k_x, k_q, k_k, k_v, k_o = jax.random.split(key, 5)

    hidden_states = jax.random.normal(k_x, (BATCH, SEQ, HIDDEN_SIZE), jnp.float32)

    torch_params = {
        "q_proj": 0.02 * jax.random.normal(k_q, (HD, HIDDEN_SIZE), jnp.float32),
        "k_proj": 0.02 * jax.random.normal(k_k, (KVD, HIDDEN_SIZE), jnp.float32),
        "v_proj": 0.02 * jax.random.normal(k_v, (KVD, HIDDEN_SIZE), jnp.float32),
        "o_proj": 0.02 * jax.random.normal(k_o, (HIDDEN_SIZE, HD), jnp.float32),
    }
    params = prepare_params(torch_params)

    cos, sin = rotary_embeddings(BATCH, SEQ, ROT_DIM, ROPE_THETA)

    out = nemotron_flash_attention2_forward(hidden_states, (cos, sin), params)
    out = jax.block_until_ready(out)

    ref = reference_forward(hidden_states, (cos, sin), torch_params)
    assert out.shape == (BATCH, SEQ, HIDDEN_SIZE)
    max_diff = jnp.max(jnp.abs(out - ref))
    assert jnp.allclose(out, ref, rtol=1e-5, atol=2e-5), f"max abs diff = {max_diff}"

    print("KERNEL_OK")
</pallas_src>

<mosaic_0001>
module attributes {stable_mosaic.version = 11 : i64} {
  func.func @_fused_attention_kernel(%arg0: i32, %arg1: memref<1x8x32xf32, #tpu.memory_space<vmem>>, %arg2: memref<32x64xf32, #tpu.memory_space<vmem>>, %arg3: memref<32x32xf32, #tpu.memory_space<vmem>>, %arg4: memref<32x32xf32, #tpu.memory_space<vmem>>, %arg5: memref<16x16xf32, #tpu.memory_space<vmem>>, %arg6: memref<1x8x32xf32, #tpu.memory_space<vmem>>, %arg7: memref<1x8x32xf32, #tpu.memory_space<vmem>>, %arg8: memref<1x8x16xf32, #tpu.memory_space<vmem>>, %arg9: memref<1x8x16xf32, #tpu.memory_space<vmem>>, %arg10: memref<1x8x32xf32, #tpu.memory_space<vmem>>) attributes {dimension_semantics = [#tpu.dimension_semantics<parallel>], iteration_bounds = array<i64: 2>, scalar_prefetch = 0 : i64, scratch_operands = 0 : i64, tpu.core_type = #tpu.core_type<tc>, window_params = [{transform_indices = @transform_0, window_bounds = array<i64: 1, 8, 32>}, {pipeline_mode = #tpu.pipeline_mode<synchronous>, transform_indices = @transform_1, window_bounds = array<i64: 32, 64>}, {pipeline_mode = #tpu.pipeline_mode<synchronous>, transform_indices = @transform_2, window_bounds = array<i64: 32, 32>}, {pipeline_mode = #tpu.pipeline_mode<synchronous>, transform_indices = @transform_3, window_bounds = array<i64: 32, 32>}, {pipeline_mode = #tpu.pipeline_mode<synchronous>, transform_indices = @transform_4, window_bounds = array<i64: 16, 16>}, {transform_indices = @transform_5, window_bounds = array<i64: 1, 8, 32>}, {transform_indices = @transform_6, window_bounds = array<i64: 1, 8, 32>}, {transform_indices = @transform_7, window_bounds = array<i64: 1, 8, 16>}, {transform_indices = @transform_8, window_bounds = array<i64: 1, 8, 16>}, {transform_indices = @transform_9, window_bounds = array<i64: 1, 8, 32>}]} {
    %c0 = arith.constant 0 : index
    %c0_0 = arith.constant 0 : index
    %c0_1 = arith.constant 0 : index
    %0 = vector.load %arg1[%c0, %c0_0, %c0_1] : memref<1x8x32xf32, #tpu.memory_space<vmem>>, vector<1x8x32xf32>
    %1 = vector.shape_cast %0 : vector<1x8x32xf32> to vector<8x32xf32>
    %c0_2 = arith.constant 0 : index
    %c0_3 = arith.constant 0 : index
    %2 = vector.load %arg2[%c0_2, %c0_3] : memref<32x64xf32, #tpu.memory_space<vmem>>, vector<32x64xf32>
    %cst = arith.constant dense<0.000000e+00> : vector<8x64xf32>
    %3 = tpu.matmul %1, %2, %cst {dimension_numbers = #tpu.dot_dimension_numbers<[1], [0], [0], [1], [0, 0, 1, 1], [], []>} : vector<8x32xf32>, vector<32x64xf32>, vector<8x64xf32> -> vector<8x64xf32>
    %4 = vector.extract_strided_slice %3 {offsets = [0, 0], sizes = [8, 32], strides = [1, 1]} : vector<8x64xf32> to vector<8x32xf32>
    %5 = vector.extract_strided_slice %3 {offsets = [0, 32], sizes = [8, 16], strides = [1, 1]} : vector<8x64xf32> to vector<8x16xf32>
    %6 = vector.extract_strided_slice %3 {offsets = [0, 48], sizes = [8, 16], strides = [1, 1]} : vector<8x64xf32> to vector<8x16xf32>
    %c0_4 = arith.constant 0 : index
    %c0_5 = arith.constant 0 : index
    %c0_6 = arith.constant 0 : index
    %7 = vector.load %arg6[%c0_4, %c0_5, %c0_6] : memref<1x8x32xf32, #tpu.memory_space<vmem>>, vector<1x8x32xf32>
    %8 = vector.shape_cast %7 : vector<1x8x32xf32> to vector<8x32xf32>
    %9 = arith.mulf %4, %8 : vector<8x32xf32>
    %c0_7 = arith.constant 0 : index
    %c0_8 = arith.constant 0 : index
    %10 = vector.load %arg4[%c0_7, %c0_8] : memref<32x32xf32, #tpu.memory_space<vmem>>, vector<32x32xf32>
    %cst_9 = arith.constant dense<0.000000e+00> : vector<8x32xf32>
    %11 = tpu.matmul %4, %10, %cst_9 {dimension_numbers = #tpu.dot_dimension_numbers<[1], [0], [0], [1], [0, 0, 1, 1], [], []>} : vector<8x32xf32>, vector<32x32xf32>, vector<8x32xf32> -> vector<8x32xf32>
    %c0_10 = arith.constant 0 : index
    %c0_11 = arith.constant 0 : index
    %c0_12 = arith.constant 0 : index
    %12 = vector.load %arg7[%c0_10, %c0_11, %c0_12] : memref<1x8x32xf32, #tpu.memory_space<vmem>>, vector<1x8x32xf32>
    %13 = vector.shape_cast %12 : vector<1x8x32xf32> to vector<8x32xf32>
    %14 = arith.mulf %11, %13 : vector<8x32xf32>
    %15 = arith.addf %9, %14 : vector<8x32xf32>
    %c0_13 = arith.constant 0 : index
    %c0_14 = arith.constant 0 : index
    %c0_15 = arith.constant 0 : index
    %16 = vector.load %arg8[%c0_13, %c0_14, %c0_15] : memref<1x8x16xf32, #tpu.memory_space<vmem>>, vector<1x8x16xf32>
    %17 = vector.shape_cast %16 : vector<1x8x16xf32> to vector<8x16xf32>
    %18 = arith.mulf %5, %17 : vector<8x16xf32>
    %c0_16 = arith.constant 0 : index
    %c0_17 = arith.constant 0 : index
    %19 = vector.load %arg5[%c0_16, %c0_17] : memref<16x16xf32, #tpu.memory_space<vmem>>, vector<16x16xf32>
    %cst_18 = arith.constant dense<0.000000e+00> : vector<8x16xf32>
    %20 = tpu.matmul %5, %19, %cst_18 {dimension_numbers = #tpu.dot_dimension_numbers<[1], [0], [0], [1], [0, 0, 1, 1], [], []>} : vector<8x16xf32>, vector<16x16xf32>, vector<8x16xf32> -> vector<8x16xf32>
    %c0_19 = arith.constant 0 : index
    %c0_20 = arith.constant 0 : index
    %c0_21 = arith.constant 0 : index
    %21 = vector.load %arg9[%c0_19, %c0_20, %c0_21] : memref<1x8x16xf32, #tpu.memory_space<vmem>>, vector<1x8x16xf32>
    %22 = vector.shape_cast %21 : vector<1x8x16xf32> to vector<8x16xf32>
    %23 = arith.mulf %20, %22 : vector<8x16xf32>
    %24 = arith.addf %18, %23 : vector<8x16xf32>
    %25 = tpu.iota {dimensions = array<i32: 0>} : vector<8x8xi32>
    %26 = tpu.iota {dimensions = array<i32: 1>} : vector<8x8xi32>
    %27 = arith.cmpi sle, %26, %25 : vector<8x8xi32>
    %c0_22 = arith.constant 0 : index
    %c0_23 = arith.constant 0 : index
    %28 = vector.load %arg3[%c0_22, %c0_23] : memref<32x32xf32, #tpu.memory_space<vmem>>, vector<32x32xf32>
    %cst_24 = arith.constant 0.000000e+00 : f32
    %29 = vector.broadcast %cst_24 : f32 to vector<8x32xf32>
    %30 = vector.extract_strided_slice %15 {offsets = [0, 0], sizes = [8, 8], strides = [1, 1]} : vector<8x32xf32> to vector<8x8xf32>
    %31 = vector.extract_strided_slice %24 {offsets = [0, 0], sizes = [8, 8], strides = [1, 1]} : vector<8x16xf32> to vector<8x8xf32>
    %32 = vector.extract_strided_slice %6 {offsets = [0, 0], sizes = [8, 8], strides = [1, 1]} : vector<8x16xf32> to vector<8x8xf32>
    %cst_25 = arith.constant dense<0.000000e+00> : vector<8x8xf32>
    %33 = tpu.matmul %30, %31, %cst_25 {dimension_numbers = #tpu.dot_dimension_numbers<[1], [1], [0], [0], [0, 0, 1, 0], [], []>} : vector<8x8xf32>, vector<8x8xf32>, vector<8x8xf32> -> vector<8x8xf32>
    %cst_26 = arith.constant 0xFF800000 : f32
    %34 = vector.broadcast %cst_26 : f32 to vector<8x8xf32>
    %35 = arith.select %27, %33, %34 : vector<8x8xi1>, vector<8x8xf32>
    %cst_27 = arith.constant dense<0xFF800000> : vector<8xf32>
    %36 = vector.multi_reduction <maximumf>, %35, %cst_27 [1] : vector<8x8xf32> to vector<8xf32>
    %37 = vector.shape_cast %36 : vector<8xf32> to vector<8x1xf32>
    %38 = vector.broadcast %37 : vector<8x1xf32> to vector<8x8xf32>
    %39 = arith.subf %35, %38 : vector<8x8xf32>
    %40 = math.exp %39 : vector<8x8xf32>
    %cst_28 = arith.constant dense<0.000000e+00> : vector<8xf32>
    %41 = vector.multi_reduction <add>, %40, %cst_28 [1] : vector<8x8xf32> to vector<8xf32>
    %42 = vector.shape_cast %41 : vector<8xf32> to vector<8x1xf32>
    %43 = tpu.reciprocal %42 : vector<8x1xf32> -> vector<8x1xf32>
    %44 = vector.broadcast %43 : vector<8x1xf32> to vector<8x8xf32>
    %45 = arith.mulf %40, %44 : vector<8x8xf32>
    %cst_29 = arith.constant dense<0.000000e+00> : vector<8x8xf32>
    %46 = tpu.matmul %45, %32, %cst_29 {dimension_numbers = #tpu.dot_dimension_numbers<[1], [0], [0], [1], [0, 0, 1, 1], [], []>} : vector<8x8xf32>, vector<8x8xf32>, vector<8x8xf32> -> vector<8x8xf32>
    %47 = vector.extract_strided_slice %28 {offsets = [0, 0], sizes = [8, 32], strides = [1, 1]} : vector<32x32xf32> to vector<8x32xf32>
    %cst_30 = arith.constant dense<0.000000e+00> : vector<8x32xf32>
    %48 = tpu.matmul %46, %47, %cst_30 {dimension_numbers = #tpu.dot_dimension_numbers<[1], [0], [0], [1], [0, 0, 1, 1], [], []>} : vector<8x8xf32>, vector<8x32xf32>, vector<8x32xf32> -> vector<8x32xf32>
    %49 = arith.addf %29, %48 : vector<8x32xf32>
    %50 = vector.extract_strided_slice %15 {offsets = [0, 8], sizes = [8, 8], strides = [1, 1]} : vector<8x32xf32> to vector<8x8xf32>
    %51 = vector.extract_strided_slice %24 {offsets = [0, 0], sizes = [8, 8], strides = [1, 1]} : vector<8x16xf32> to vector<8x8xf32>
    %52 = vector.extract_strided_slice %6 {offsets = [0, 0], sizes = [8, 8], strides = [1, 1]} : vector<8x16xf32> to vector<8x8xf32>
    %cst_31 = arith.constant dense<0.000000e+00> : vector<8x8xf32>
    %53 = tpu.matmul %50, %51, %cst_31 {dimension_numbers = #tpu.dot_dimension_numbers<[1], [1], [0], [0], [0, 0, 1, 0], [], []>} : vector<8x8xf32>, vector<8x8xf32>, vector<8x8xf32> -> vector<8x8xf32>
    %cst_32 = arith.constant 0xFF800000 : f32
    %54 = vector.broadcast %cst_32 : f32 to vector<8x8xf32>
    %55 = arith.select %27, %53, %54 : vector<8x8xi1>, vector<8x8xf32>
    %cst_33 = arith.constant dense<0xFF800000> : vector<8xf32>
    %56 = vector.multi_reduction <maximumf>, %55, %cst_33 [1] : vector<8x8xf32> to vector<8xf32>
    %57 = vector.shape_cast %56 : vector<8xf32> to vector<8x1xf32>
    %58 = vector.broadcast %57 : vector<8x1xf32> to vector<8x8xf32>
    %59 = arith.subf %55, %58 : vector<8x8xf32>
    %60 = math.exp %59 : vector<8x8xf32>
    %cst_34 = arith.constant dense<0.000000e+00> : vector<8xf32>
    %61 = vector.multi_reduction <add>, %60, %cst_34 [1] : vector<8x8xf32> to vector<8xf32>
    %62 = vector.shape_cast %61 : vector<8xf32> to vector<8x1xf32>
    %63 = tpu.reciprocal %62 : vector<8x1xf32> -> vector<8x1xf32>
    %64 = vector.broadcast %63 : vector<8x1xf32> to vector<8x8xf32>
    %65 = arith.mulf %60, %64 : vector<8x8xf32>
    %cst_35 = arith.constant dense<0.000000e+00> : vector<8x8xf32>
    %66 = tpu.matmul %65, %52, %cst_35 {dimension_numbers = #tpu.dot_dimension_numbers<[1], [0], [0], [1], [0, 0, 1, 1], [], []>} : vector<8x8xf32>, vector<8x8xf32>, vector<8x8xf32> -> vector<8x8xf32>
    %67 = vector.extract_strided_slice %28 {offsets = [8, 0], sizes = [8, 32], strides = [1, 1]} : vector<32x32xf32> to vector<8x32xf32>
    %cst_36 = arith.constant dense<0.000000e+00> : vector<8x32xf32>
    %68 = tpu.matmul %66, %67, %cst_36 {dimension_numbers = #tpu.dot_dimension_numbers<[1], [0], [0], [1], [0, 0, 1, 1], [], []>} : vector<8x8xf32>, vector<8x32xf32>, vector<8x32xf32> -> vector<8x32xf32>
    %69 = arith.addf %49, %68 : vector<8x32xf32>
    %70 = vector.extract_strided_slice %15 {offsets = [0, 16], sizes = [8, 8], strides = [1, 1]} : vector<8x32xf32> to vector<8x8xf32>
    %71 = vector.extract_strided_slice %24 {offsets = [0, 8], sizes = [8, 8], strides = [1, 1]} : vector<8x16xf32> to vector<8x8xf32>
    %72 = vector.extract_strided_slice %6 {offsets = [0, 8], sizes = [8, 8], strides = [1, 1]} : vector<8x16xf32> to vector<8x8xf32>
    %cst_37 = arith.constant dense<0.000000e+00> : vector<8x8xf32>
    %73 = tpu.matmul %70, %71, %cst_37 {dimension_numbers = #tpu.dot_dimension_numbers<[1], [1], [0], [0], [0, 0, 1, 0], [], []>} : vector<8x8xf32>, vector<8x8xf32>, vector<8x8xf32> -> vector<8x8xf32>
    %cst_38 = arith.constant 0xFF800000 : f32
    %74 = vector.broadcast %cst_38 : f32 to vector<8x8xf32>
    %75 = arith.select %27, %73, %74 : vector<8x8xi1>, vector<8x8xf32>
    %cst_39 = arith.constant dense<0xFF800000> : vector<8xf32>
    %76 = vector.multi_reduction <maximumf>, %75, %cst_39 [1] : vector<8x8xf32> to vector<8xf32>
    %77 = vector.shape_cast %76 : vector<8xf32> to vector<8x1xf32>
    %78 = vector.broadcast %77 : vector<8x1xf32> to vector<8x8xf32>
    %79 = arith.subf %75, %78 : vector<8x8xf32>
    %80 = math.exp %79 : vector<8x8xf32>
    %cst_40 = arith.constant dense<0.000000e+00> : vector<8xf32>
    %81 = vector.multi_reduction <add>, %80, %cst_40 [1] : vector<8x8xf32> to vector<8xf32>
    %82 = vector.shape_cast %81 : vector<8xf32> to vector<8x1xf32>
    %83 = tpu.reciprocal %82 : vector<8x1xf32> -> vector<8x1xf32>
    %84 = vector.broadcast %83 : vector<8x1xf32> to vector<8x8xf32>
    %85 = arith.mulf %80, %84 : vector<8x8xf32>
    %cst_41 = arith.constant dense<0.000000e+00> : vector<8x8xf32>
    %86 = tpu.matmul %85, %72, %cst_41 {dimension_numbers = #tpu.dot_dimension_numbers<[1], [0], [0], [1], [0, 0, 1, 1], [], []>} : vector<8x8xf32>, vector<8x8xf32>, vector<8x8xf32> -> vector<8x8xf32>
    %87 = vector.extract_strided_slice %28 {offsets = [16, 0], sizes = [8, 32], strides = [1, 1]} : vector<32x32xf32> to vector<8x32xf32>
    %cst_42 = arith.constant dense<0.000000e+00> : vector<8x32xf32>
    %88 = tpu.matmul %86, %87, %cst_42 {dimension_numbers = #tpu.dot_dimension_numbers<[1], [0], [0], [1], [0, 0, 1, 1], [], []>} : vector<8x8xf32>, vector<8x32xf32>, vector<8x32xf32> -> vector<8x32xf32>
    %89 = arith.addf %69, %88 : vector<8x32xf32>
    %90 = vector.extract_strided_slice %15 {offsets = [0, 24], sizes = [8, 8], strides = [1, 1]} : vector<8x32xf32> to vector<8x8xf32>
    %91 = vector.extract_strided_slice %24 {offsets = [0, 8], sizes = [8, 8], strides = [1, 1]} : vector<8x16xf32> to vector<8x8xf32>
    %92 = vector.extract_strided_slice %6 {offsets = [0, 8], sizes = [8, 8], strides = [1, 1]} : vector<8x16xf32> to vector<8x8xf32>
    %cst_43 = arith.constant dense<0.000000e+00> : vector<8x8xf32>
    %93 = tpu.matmul %90, %91, %cst_43 {dimension_numbers = #tpu.dot_dimension_numbers<[1], [1], [0], [0], [0, 0, 1, 0], [], []>} : vector<8x8xf32>, vector<8x8xf32>, vector<8x8xf32> -> vector<8x8xf32>
    %cst_44 = arith.constant 0xFF800000 : f32
    %94 = vector.broadcast %cst_44 : f32 to vector<8x8xf32>
    %95 = arith.select %27, %93, %94 : vector<8x8xi1>, vector<8x8xf32>
    %cst_45 = arith.constant dense<0xFF800000> : vector<8xf32>
    %96 = vector.multi_reduction <maximumf>, %95, %cst_45 [1] : vector<8x8xf32> to vector<8xf32>
    %97 = vector.shape_cast %96 : vector<8xf32> to vector<8x1xf32>
    %98 = vector.broadcast %97 : vector<8x1xf32> to vector<8x8xf32>
    %99 = arith.subf %95, %98 : vector<8x8xf32>
    %100 = math.exp %99 : vector<8x8xf32>
    %cst_46 = arith.constant dense<0.000000e+00> : vector<8xf32>
    %101 = vector.multi_reduction <add>, %100, %cst_46 [1] : vector<8x8xf32> to vector<8xf32>
    %102 = vector.shape_cast %101 : vector<8xf32> to vector<8x1xf32>
    %103 = tpu.reciprocal %102 : vector<8x1xf32> -> vector<8x1xf32>
    %104 = vector.broadcast %103 : vector<8x1xf32> to vector<8x8xf32>
    %105 = arith.mulf %100, %104 : vector<8x8xf32>
    %cst_47 = arith.constant dense<0.000000e+00> : vector<8x8xf32>
    %106 = tpu.matmul %105, %92, %cst_47 {dimension_numbers = #tpu.dot_dimension_numbers<[1], [0], [0], [1], [0, 0, 1, 1], [], []>} : vector<8x8xf32>, vector<8x8xf32>, vector<8x8xf32> -> vector<8x8xf32>
    %107 = vector.extract_strided_slice %28 {offsets = [24, 0], sizes = [8, 32], strides = [1, 1]} : vector<32x32xf32> to vector<8x32xf32>
    %cst_48 = arith.constant dense<0.000000e+00> : vector<8x32xf32>
    %108 = tpu.matmul %106, %107, %cst_48 {dimension_numbers = #tpu.dot_dimension_numbers<[1], [0], [0], [1], [0, 0, 1, 1], [], []>} : vector<8x8xf32>, vector<8x32xf32>, vector<8x32xf32> -> vector<8x32xf32>
    %109 = arith.addf %89, %108 : vector<8x32xf32>
    %c0_49 = arith.constant 0 : index
    %c0_50 = arith.constant 0 : index
    %c0_51 = arith.constant 0 : index
    %110 = vector.load %arg10[%c0_49, %c0_50, %c0_51] : memref<1x8x32xf32, #tpu.memory_space<vmem>>, vector<1x8x32xf32>
    %111 = vector.shape_cast %110 : vector<1x8x32xf32> to vector<8x32xf32>
    %112 = vector.shape_cast %109 : vector<8x32xf32> to vector<1x8x32xf32>
    tpu.vector_store %arg10[%c0_49, %c0_50, %c0_51], %112 {strides = array<i32>} : memref<1x8x32xf32, #tpu.memory_space<vmem>>, vector<1x8x32xf32>,
    return
  }
  func.func @transform_0(%arg0: i32) -> (i32, i32, i32) {
    %c0_i32 = arith.constant 0 : i32
    %c0_i32_0 = arith.constant 0 : i32
    %c0_i32_1 = arith.constant 0 : i32
    return %arg0, %c0_i32, %c0_i32_0 : i32, i32, i32
  }
  func.func @transform_1(%arg0: i32) -> (i32, i32) {
    %c0_i32 = arith.constant 0 : i32
    %c0_i32_0 = arith.constant 0 : i32
    %c0_i32_1 = arith.constant 0 : i32
    return %c0_i32, %c0_i32_0 : i32, i32
  }
  func.func @transform_2(%arg0: i32) -> (i32, i32) {
    %c0_i32 = arith.constant 0 : i32
    %c0_i32_0 = arith.constant 0 : i32
    %c0_i32_1 = arith.constant 0 : i32
    return %c0_i32, %c0_i32_0 : i32, i32
  }
  func.func @transform_3(%arg0: i32) -> (i32, i32) {
    %c0_i32 = arith.constant 0 : i32
    %c0_i32_0 = arith.constant 0 : i32
    %c0_i32_1 = arith.constant 0 : i32
    return %c0_i32, %c0_i32_0 : i32, i32
  }
  func.func @transform_4(%arg0: i32) -> (i32, i32) {
    %c0_i32 = arith.constant 0 : i32
    %c0_i32_0 = arith.constant 0 : i32
    %c0_i32_1 = arith.constant 0 : i32
    return %c0_i32, %c0_i32_0 : i32, i32
  }
  func.func @transform_5(%arg0: i32) -> (i32, i32, i32) {
    %c0_i32 = arith.constant 0 : i32
    %c0_i32_0 = arith.constant 0 : i32
    %c0_i32_1 = arith.constant 0 : i32
    return %arg0, %c0_i32, %c0_i32_0 : i32, i32, i32
  }
  func.func @transform_6(%arg0: i32) -> (i32, i32, i32) {
    %c0_i32 = arith.constant 0 : i32
    %c0_i32_0 = arith.constant 0 : i32
    %c0_i32_1 = arith.constant 0 : i32
    return %arg0, %c0_i32, %c0_i32_0 : i32, i32, i32
  }
  func.func @transform_7(%arg0: i32) -> (i32, i32, i32) {
    %c0_i32 = arith.constant 0 : i32
    %c0_i32_0 = arith.constant 0 : i32
    %c0_i32_1 = arith.constant 0 : i32
    return %arg0, %c0_i32, %c0_i32_0 : i32, i32, i32
  }
  func.func @transform_8(%arg0: i32) -> (i32, i32, i32) {
    %c0_i32 = arith.constant 0 : i32
    %c0_i32_0 = arith.constant 0 : i32
    %c0_i32_1 = arith.constant 0 : i32
    return %arg0, %c0_i32, %c0_i32_0 : i32, i32, i32
  }
  func.func @transform_9(%arg0: i32) -> (i32, i32, i32) {
    %c0_i32 = arith.constant 0 : i32
    %c0_i32_0 = arith.constant 0 : i32
    %c0_i32_1 = arith.constant 0 : i32
    return %arg0, %c0_i32, %c0_i32_0 : i32, i32, i32
  }
}

</mosaic_0001>

<bundles_post_ra>
// kernel: tpu_custom_call.1
= control target key start
LH: loop header
LB: loop body
LE: loop exit
PB: predicated region body
PF: predicated region fallthrough
CT: control target
= control target key end

     0   :  { %s2225_s0 = inlined_call_operand.hbm [shape: f32[2,8,32], index: 0, kind: input, shape index: {}]   ;;  %s2226_s1 = inlined_call_operand.hbm [shape: f32[32,64], index: 1, kind: input, shape index: {}]   ;;  %s2227_s2 = inlined_call_operand.hbm [shape: f32[32,32], index: 2, kind: input, shape index: {}]   ;;  %s2228_s3 = inlined_call_operand.hbm [shape: f32[32,32], index: 3, kind: input, shape index: {}]   ;;  %s2229_s4 = inlined_call_operand.hbm [shape: f32[16,16], index: 4, kind: input, shape index: {}]   ;;  %s2230_s5 = inlined_call_operand.hbm [shape: f32[2,8,32], index: 5, kind: input, shape index: {}]   ;;  %s2231_s6 = inlined_call_operand.hbm [shape: f32[2,8,32], index: 6, kind: input, shape index: {}]   ;;  %s2232_s7 = inlined_call_operand.hbm [shape: f32[2,8,16], index: 7, kind: input, shape index: {}]   ;;  %s2233_s8 = inlined_call_operand.hbm [shape: f32[2,8,16], index: 8, kind: input, shape index: {}]   ;;  %s2234_s9 = inlined_call_operand.hbm [shape: f32[2,8,32], index: 9, kind: output, shape index: {}]  }
   0x1   :  { %2251 = sst [smem:[#allocation31_spill]] %s2226_s1 }
   0x2   :  { %2252 = sst [smem:[#allocation32_spill]] %s2227_s2 }
   0x3   :  { %2253 = sst [smem:[#allocation33_spill]] %s2228_s3 }
   0x4   :  { %2254 = sst [smem:[#allocation34_spill]] %s2230_s5 }
   0x5   :  { %2255 = sst [smem:[#allocation35_spill]] %s2234_s9 }
   0x6   :  { %14 = vsyncpa [#allocation3], 0 }
   0x7   :  { %16 = vsyncpa [#allocation3 + $0x1], 0 }
   0x8   :  { %17 = vsyncpa [#allocation6], 0 }
   0x9   :  { %18 = vsyncpa [#allocation9], 0 }
   0xa   :  { %19 = vsyncpa [#allocation12], 0 }
   0xb   :  { %21 = vsyncpa [#allocation12 + $0x1], 0 }
   0xc   :  { %22 = vsyncpa [#allocation15], 0 }
   0xd   :  { %24 = vsyncpa [#allocation15 + $0x1], 0 }
   0xe   :  { %25 = vsyncpa [#allocation4], 0 }
   0xf   :  { %27 = vsyncpa [#allocation4 + $0x1], 0  ;;  %s1886_s30 = smov 0   ;;  %s1888_s10 = smov 0  }
  0x10   :  { %s1890_s11 = smov 0   ;;  %s1892_s12 = smov 0  }
  0x11 LB: > { %2256 = sst [smem:[#allocation24_spill]] %s1808_s30  ;;  %s1907_s13 = sadd.s32 4294967295, %s1820_s12   ;;  %s1820_s12 = sphi %s1892_s12, %s2288_s12   ;;  %s1816_s11 = sphi %s1890_s11, %s2292_s11   ;;  %s1812_s10 = sphi %s1888_s10, %s2291_s10   ;;  %s1808_s30 = sphi %s1886_s30, %s2290_s30  }
  0x12   : > { %2257 = sst [smem:[#allocation25_spill]] %s1820_s12  ;;  %s1284_s14 = sadd.s32 4294967294, %s1820_s12  }
  0x13   : > { %2258 = sst [smem:[#allocation26_spill]] %s1907_s13  ;;  %p53_p0 = scmp.ne.s32.totalorder %s1812_s10, %s1808_s30 }
  0x14   : > { %p2244_p1 = scmp.eq.s32.totalorder %s1907_s13, 0  ;;  %p265_p2 = scmp.eq.s32.totalorder %s1907_s13, 1 }
  0x15   : > { %p271_p3 = scmp.eq.s32.totalorder %s1284_s14, 1  ;;  %p1285_p5 = scmp.ge.s32.totalorder %s1820_s12, 1 }
  0x16   : > { %p1916_p4 = por %p2244_p1, %p53_p0  ;;  %p278_p7 = scmp.lt.s32.totalorder %s1820_s12, 3 }
  0x17   : > { %p1921_p6 = por %p271_p3, %p53_p0  ;;  %s2262_s1 = sld [smem:[#allocation31_spill]] }
  0x18   : > { %p1929_p8 = pnand %p1285_p5, %p278_p7  ;;  %s1822_s21 = smov [#allocation5]  }
  0x19   : > { %s2260_s16 = scalar_select %p1921_p6, 1, 0 }
  0x1a   : > { %p1363_p9 = pneg %p1929_p8  ;;  %s291_s22 = sshll.u32 %s1822_s21, 4  ;;  %s292_s22 = int_to_ptr.vmem [resolvable:$true] %s291_s22 }
  0x1b   : > { %2261 = sst [smem:[#allocation27_spill]] %s2260_s16  ;;  %s2235_s27 = smov 128  }
  0x1c   : > { %p1937_p10 = pnand %p1363_p9, %p2244_p1  ;;  %s2265_s3 = sld [smem:[#allocation33_spill]] }
  0x1d   : > { %s289_s19 = sshll.u32 %s2262_s1, 4  ;;  %s2237_s28 = smov 8   ;;  %s290_s19 = int_to_ptr.hbm [resolvable:$true] %s289_s19 }
  0x1e   : > { %1366 = dma.hbm_to_vmem [thread:$0]  (!%p1937_p10), %s290_s19, 512, %s292_s22, [#allocation6], %s2235_s27, %s2235_s27, %s2237_s28  }
  0x1f   : > { %s1825_s29 = smov [#allocation8]   ;;  %s1956_s17 = sadd.s32 1, %s1820_s12  }
  0x20   : > { %s319_s14 = sshll.u32 %s1825_s29, 4  ;;  %2266 = sst [smem:[#allocation28_spill]] %s1956_s17  ;;  %s320_s14 = int_to_ptr.vmem [resolvable:$true] %s319_s14 }
  0x21   : > { %s40_s18 = sadd.s32 1, %s1816_s11  ;;  %s37_s21 = ssub.s32 %s1820_s12, %s1956_s17 }
  0x22   : > { %s317_s26 = sshll.u32 %s2265_s3, 4  ;;  %p47_p12 = scmp.ne.s32.totalorder %s1816_s11, %s1812_s10  ;;  %s318_s26 = int_to_ptr.hbm [resolvable:$true] %s317_s26 }
  0x23   : > { %1372 = dma.hbm_to_vmem [thread:$0]  (!%p1937_p10), %s318_s26, 512, %s320_s14, [#allocation9], %s2235_s27, %s2235_s27, %s2237_s28  }
  0x24   : > { %p38_p13 = scmp.eq.s32.totalorder %s37_s21, 0  ;;  %p48_p0 = scmp.eq.s32.totalorder %s1820_s12, 0 }
  0x25   : > { %p1966_p3 = por %p265_p2, %p47_p12  ;;  %p1400_p5 = scmp.lt.s32.totalorder %s1820_s12, 2 }
  0x26   : > { %s1972_s22 = scalar_select %p38_p13, %s1816_s11, %s40_s18  }
  0x27   : > { %s2267_s19 = scalar_select %p1966_p3, 1, 0 }
  0x28   : > { %2269 = sst [smem:[#allocation30_spill]] %s1972_s22  ;;  %p49_p7 = por %p48_p0, %p47_p12 }
  0x29   : > { %2268 = sst [smem:[#allocation29_spill]] %s2267_s19  ;;  %s2239_s24 = sand.u32 1, %s1816_s11  }
  0x2a   : > { %s1977_s25 = sshll.u32 %s2239_s24, 3  ;;  %s1980_s26 = sshll.u32 %s1820_s12, 3 }
  0x2b   : > { %p1982_p9 = pnand %p1400_p5, %p49_p7  ;;  %s366_s14 = sand.u32 1, %s1820_s12  }
  0x2c   : > { %s2271_s5 = sld [smem:[#allocation34_spill]]  ;;  %s370_s1 = scalar_lea.vmem [#allocation11], %s1977_s25 }
  0x2d   : > { %s378_s3 = sshll.u32 %s370_s1, 4  ;;  %s1992_s24 = scalar_lea.sflag [#allocation12], %s366_s14  ;;  %s379_s3 = int_to_ptr.vmem [resolvable:$true] %s378_s3 }
  0x2e   : > { %p1996_p12 = pneg %p1982_p9 }
  0x32   : > { %s374_s18 = scalar_lea.hbm %s2271_s5, %s1980_s26  ;;  %s1535_s1 = scalar_lea.hbm %s2271_s5, 16 }
  0x33   : > { %s376_s28 = sshll.u32 %s374_s18, 4  ;;  %s377_s28 = int_to_ptr.hbm [resolvable:$true] %s376_s28 }
  0x34   : > { %s1528_s22 = sshra.s32 %s377_s28, 4  ;;  %s1529_s22 = int_to_ptr.hbm [resolvable:$true] %s1528_s22 }
  0x35   : > { %s1530_s17 = scalar_lea.hbm %s1529_s22, 8  ;;  %p1536_p5 = scmp.lt.s32.totalorder %s1529_s22, %s2271_s5 }
  0x36   : > { %p1531_p2 = scmp.ne.s32.totalorder %s1529_s22, %s1530_s17  ;;  %p1537_p7 = scmp.lt.s32.totalorder %s1535_s1, %s1530_s17 }
  0x38   : > { %p1533_p13 = pnand %p1996_p12, %p1531_p2  ;;  %p1538_p11 = por %p1537_p7, %p1536_p5 }
  0x3a   : > { %p1534_p0 = pneg %p1533_p13 }
  0x3c   : > { %p1539_p1 = pnand %p1538_p11, %p1534_p0 }
  0x3e   : > { %1542 = shalt.err (!%p1539_p1)
}
  0x3f   : > { %1382 = dma.hbm_to_vmem [thread:$0]  (!%p1982_p9), %s377_s28, 128, %s379_s3, %s1992_s24  }
  0x40   : > { %s412_s27 = scalar_lea.hbm %s2232_s7, %s1980_s26  ;;  %s408_s21 = scalar_lea.vmem [#allocation14], %s1977_s25 }
  0x41   : > { %s416_s9 = sshll.u32 %s408_s21, 4  ;;  %s414_s13 = sshll.u32 %s412_s27, 4  ;;  %s417_s9 = int_to_ptr.vmem [resolvable:$true] %s416_s9  ;;  %s415_s13 = int_to_ptr.hbm [resolvable:$true] %s414_s13 }
  0x42   : > { %s2273_s2 = sld [smem:[#allocation32_spill]]  ;;  %s2019_s1 = scalar_lea.sflag [#allocation15], %s366_s14 }
  0x43   : > { %s1558_s18 = sshra.s32 %s415_s13, 4  ;;  %s1565_s28 = scalar_lea.hbm %s2232_s7, 16  ;;  %s1559_s18 = int_to_ptr.hbm [resolvable:$true] %s1558_s18 }
  0x44   : > { %s1560_s5 = scalar_lea.hbm %s1559_s18, 8  ;;  %p1566_p13 = scmp.lt.s32.totalorder %s1559_s18, %s2232_s7 }
  0x45   : > { %p1561_p1 = scmp.ne.s32.totalorder %s1559_s18, %s1560_s5  ;;  %p1567_p0 = scmp.lt.s32.totalorder %s1565_s28, %s1560_s5 }
  0x47   : > { %p1563_p11 = pnand %p1561_p1, %p1996_p12  ;;  %p1568_p5 = por %p1567_p0, %p1566_p13 }
  0x48   : > { %s303_s22 = sshll.u32 %s2273_s2, 4  ;;  %s304_s22 = int_to_ptr.hbm [resolvable:$true] %s303_s22 }
  0x49   : > { %p1564_p2 = pneg %p1563_p11 }
  0x4b   : > { %p1569_p7 = pnand %p1568_p5, %p1564_p2 }
  0x4d   : > { %1572 = shalt.err (!%p1569_p7)
}
  0x4e   : > { %1388 = dma.hbm_to_vmem [thread:$0]  (!%p1982_p9), %s415_s13, 128, %s417_s9, %s2019_s1  }
  0x4f   : > { %s1826_s14 = smov [#allocation7]   ;;  %s331_s18 = sshll.u32 %s2229_s4, 4  ;;  %s332_s18 = int_to_ptr.hbm [resolvable:$true] %s331_s18 }
  0x50   : > { %s305_s21 = sshll.u32 %s1826_s14, 4  ;;  %s2274_s5 = smov 8   ;;  %s306_s21 = int_to_ptr.vmem [resolvable:$true] %s305_s21 }
  0x51   : > { %s2275_s3 = smov 128   ;;  %s1827_s30 = smov [#allocation10]  }
  0x52   : > { %1369 = dma.hbm_to_vmem [thread:$0]  (!%p1937_p10), %s304_s22, 512, %s306_s21, [#allocation6], %s2275_s3, %s2275_s3, %s2274_s5  }
  0x53   : > { %s333_s28 = sshll.u32 %s1827_s30, 4  ;;  %s355_s19 = scalar_lea.hbm %s2225_s0, %s1980_s26  ;;  %s334_s28 = int_to_ptr.vmem [resolvable:$true] %s333_s28 }
  0x54   : > { %1375 = dma.hbm_to_vmem [thread:$0]  (!%p1937_p10), %s332_s18, 256, %s334_s28, [#allocation9], %s2275_s3, %s2275_s3, %s2274_s5  }
  0x55   : > { %s357_s27 = sshll.u32 %s355_s19, 4  ;;  %s351_s14 = scalar_lea.vmem [#allocation2], %s1977_s25  ;;  %s358_s27 = int_to_ptr.hbm [resolvable:$true] %s357_s27 }
  0x56   : > { %s359_s12 = sshll.u32 %s351_s14, 4  ;;  %s2276_s17 = sand.u32 1, %s1816_s11   ;;  %s360_s12 = int_to_ptr.vmem [resolvable:$true] %s359_s12 }
  0x57   : > { %s348_s22 = scalar_lea.sflag [#allocation3], %s2276_s17  ;;  %s1648_s21 = sshra.s32 %s358_s27, 4  ;;  %s1649_s21 = int_to_ptr.hbm [resolvable:$true] %s1648_s21 }
  0x58   : > { %s1650_s30 = scalar_lea.hbm %s1649_s21, 8  ;;  %s1655_s13 = scalar_lea.hbm %s2225_s0, 16 }
  0x59   : > { %p1651_p1 = scmp.ne.s32.totalorder %s1649_s21, %s1650_s30  ;;  %p1656_p10 = scmp.lt.s32.totalorder %s1649_s21, %s2225_s0 }
  0x5a   : > { %p1657_p13 = scmp.lt.s32.totalorder %s1655_s13, %s1650_s30 }
  0x5b   : > { %p1653_p11 = pnand %p1651_p1, %p1996_p12 }
  0x5c   : > { %p1658_p0 = por %p1657_p13, %p1656_p10 }
  0x5d   : > { %p1654_p2 = pneg %p1653_p11 }
  0x5f   : > { %p1659_p5 = pnand %p1658_p0, %p1654_p2 }
  0x61   : > { %1662 = shalt.err (!%p1659_p5)
}
  0x62   : > { %1379 = dma.hbm_to_vmem [thread:$0]  (!%p1982_p9), %s358_s27, 128, %s360_s12, %s348_s22  }
  0x63   : > { %s393_s28 = scalar_lea.hbm %s2231_s6, %s1980_s26  ;;  %s389_s14 = scalar_lea.vmem [#allocation13], %s1977_s25 }
  0x64   : > { %s395_s19 = sshll.u32 %s393_s28, 4  ;;  %s397_s17 = sshll.u32 %s389_s14, 4  ;;  %s396_s19 = int_to_ptr.hbm [resolvable:$true] %s395_s19  ;;  %s398_s17 = int_to_ptr.vmem [resolvable:$true] %s397_s17 }
  0x65   : > { %s1678_s2 = sshra.s32 %s396_s19, 4  ;;  %s1685_s27 = scalar_lea.hbm %s2231_s6, 16  ;;  %s1679_s2 = int_to_ptr.hbm [resolvable:$true] %s1678_s2 }
  0x66   : > { %s1680_s21 = scalar_lea.hbm %s1679_s2, 8  ;;  %p1686_p2 = scmp.lt.s32.totalorder %s1679_s2, %s2231_s6 }
  0x67   : > { %p1681_p7 = scmp.ne.s32.totalorder %s1679_s2, %s1680_s21  ;;  %p1687_p10 = scmp.lt.s32.totalorder %s1685_s27, %s1680_s21 }
  0x69   : > { %p1683_p1 = pnand %p1681_p7, %p1996_p12  ;;  %p1688_p13 = por %p1687_p10, %p1686_p2 }
  0x6b   : > { %p1684_p11 = pneg %p1683_p1 }
  0x6d   : > { %p1689_p0 = pnand %p1688_p13, %p1684_p11 }
  0x6f   : > { %1692 = shalt.err (!%p1689_p0)
}
  0x70   : > { %1385 = dma.hbm_to_vmem [thread:$0]  (!%p1982_p9), %s396_s19, 128, %s398_s17, %s1992_s24  }
  0x71   : > { %s431_s18 = scalar_lea.hbm %s2233_s8, %s1980_s26  ;;  %s427_s3 = scalar_lea.vmem [#allocation16], %s1977_s25 }
  0x72   : > { %s433_s5 = sshll.u32 %s431_s18, 4  ;;  %s435_s28 = sshll.u32 %s427_s3, 4  ;;  %s434_s5 = int_to_ptr.hbm [resolvable:$true] %s433_s5  ;;  %s436_s28 = int_to_ptr.vmem [resolvable:$true] %s435_s28 }
  0x73   : > { %s1708_s14 = sshra.s32 %s434_s5, 4  ;;  %s1715_s24 = scalar_lea.hbm %s2233_s8, 16  ;;  %s1709_s14 = int_to_ptr.hbm [resolvable:$true] %s1708_s14 }
  0x74   : > { %s1710_s2 = scalar_lea.hbm %s1709_s14, 8  ;;  %p1716_p11 = scmp.lt.s32.totalorder %s1709_s14, %s2233_s8 }
  0x75   : > { %p1711_p5 = scmp.ne.s32.totalorder %s1709_s14, %s1710_s2  ;;  %p1717_p2 = scmp.lt.s32.totalorder %s1715_s24, %s1710_s2 }
  0x77   : > { %p1713_p7 = pnand %p1711_p5, %p1996_p12  ;;  %p1718_p10 = por %p1717_p2, %p1716_p11 }
  0x79   : > { %p1714_p1 = pneg %p1713_p7 }
  0x7b   : > { %p1719_p13 = pnand %p1718_p10, %p1714_p1 }
  0x7d   : > { %1722 = shalt.err (!%p1719_p13)
}
  0x7e   : > { %1391 = dma.hbm_to_vmem [thread:$0]  (!%p1982_p9), %s434_s5, 128, %s436_s28, %s2019_s1  }
  0x7f   : > { %444 = sbr.rel (%p1929_p8) target bundleno = 1967 (0x7af), region = 56  ;;  %s2097_s16 = sand.u32 (!%p1929_p8), 1, %s1812_s10  }
  0x80   : > { %s2100_s25 = sshll.u32 (!%p1929_p8), %s2097_s16, 3  ;;  %s447_s26 = scalar_lea.sflag (!%p1929_p8), [#allocation3], %s2097_s16 }
  0x81   : > { %s450_s9 = scalar_lea.vmem (!%p1929_p8), [#allocation2], %s2100_s25 }
  0x84   : > { %1783 = dma.done.wait (%p1916_p4), %s447_s26, 128  }
  0x85   : > { %1785 = vsyncadd (%p1916_p4), %s447_s26, 4294967168  ;;  %s2277_s29 = sld [smem:[#allocation26_spill]] }
  0x8b   : > { %p2278_p9 = scmp.eq.s32.totalorder %s2277_s29, 0 }
  0x8d   : > { %1787 = dma.done.wait (%p2278_p9), [#allocation6], 1024   ;;  %p2279_p8 = pmov %p2278_p9 }
  0x8f   : > { %1789 = vsyncadd (%p2279_p8), [#allocation6], 4294966272  ;;  %p2280_p12 = pmov %p2279_p8 }
  0x90   : > { %p2281_p0 = pmov %p2279_p8 }
  0x91   : > { %1791 = dma.done.wait (%p2280_p12), [#allocation9], 768  }
  0x92   : > { %1793 = vsyncadd (%p2281_p0), [#allocation9], 4294966528  ;;  %s476_s20 = sand.u32 1, %s2277_s29   ;;  %s480_s27 = scalar_lea.vmem [#allocation11], %s2100_s25 }
  0x93   : > { %s477_s1 = scalar_lea.sflag [#allocation12], %s476_s20 }
  0x94   : > { %1795 = dma.done.wait (%p1916_p4), %s477_s1, 256  }
  0x95   : > { %1797 = vsyncadd (%p1916_p4), %s477_s1, 4294967040  ;;  %s490_s12 = scalar_lea.vmem [#allocation13], %s2100_s25  ;;  %s497_s22 = scalar_lea.sflag [#allocation15], %s476_s20 }
  0x96   : > { %s500_s23 = scalar_lea.vmem [#allocation14], %s2100_s25 }
  0x97   : > { %1799 = dma.done.wait (%p1916_p4), %s497_s22, 256  }
  0x98   : > { %1801 = vsyncadd (%p1916_p4), %s497_s22, 4294967040  ;;  %v570_v0 = vld [vmem:[#allocation5 + $0x18] sm:$0xff]  ;;  %v569_v1 = vld [vmem:[#allocation5 + $0x10] sm:$0xff]  ;;  %vm571_vm0 = vcmask 261120   ;;  %s1828_s15 = smov 96   ;;  %s1829_s13 = smov 32   ;;  %v667_v30 = vlaneseq }
  0x99   : > { %587 = vmatpush.msra.mxu0 %v570_v0  ;;  %v600_v2 = vld [vmem:[#allocation8 + $0x18] sm:$0xff]  ;;  %v568_v3 = vld [vmem:[#allocation5 + $0x8] sm:$0xff]  ;;  %v599_v4 = vld [vmem:[#allocation8 + $0x10] sm:$0xff]  ;;  %s1830_s18 = smov 80   ;;  %vm637_vm1 = vcmask 130048   ;;  %s1831_s5 = smov 104  }
  0x9a   : > { %616 = vmatpush.msra.mxu1 %v600_v2  ;;  %v598_v5 = vld [vmem:[#allocation8 + $0x8] sm:$0xff]  ;;  %v567_v6 = vld [vmem:[#allocation5] sm:$0xff]  ;;  %v566_v7 = vld [vmem:[%s450_s9] sm:$0xff]  ;;  %s510_s3 = scalar_lea.vmem [#allocation16], %s2100_s25  ;;  %s1832_s28 = smov 120   ;;  %vm679_vm2 = vcmask 64512  }
  0x9b   : > { %588 = vmatpush.msra.mxu0 %v569_v1  ;;  %v597_v8 = vld [vmem:[#allocation8] sm:$0xff]  ;;  %v634_v9 = vld [vmem:[#allocation10 + $0x8] sm:$0xff]  ;;  %v627_v12 = vld [vmem:[%s500_s23] sm:$0xff]  ;;  %s1833_s14 = smov 112   ;;  %v2148_v31 = vshrl.u32 %v667_v30, 7  ;;  %v2150_v32 = vand.u32 127, %v667_v30 }
  0x9c   : > { %617 = vmatpush.msra.mxu1 %v599_v4  ;;  %v633_v10 = vld [vmem:[#allocation10] sm:$0xff]  ;;  %654 = vmatpush.msra.mxu2 %v634_v9  ;;  %v595_v15 = vld [vmem:[%s480_s27] sm:$0xff]  ;;  %s1834_s2 = smov 88   ;;  %s1835_s21 = smov 72  }
  0x9d   : > { %589 = vmatpush.msra.mxu0 %v568_v3  ;;  %v624_v16 = vld [vmem:[%s490_s12] sm:$0xff]  ;;  %vm671_vm3 = vcmp.le.s32.totalorder %v2150_v32, %v2148_v31  ;;  %s1332_s30 = sshll.u32 %s2277_s29, 3  ;;  %s2282_s17 = sld [smem:[#allocation35_spill]] }
  0x9e   : > { %618 = vmatpush.msra.mxu1 %v598_v5  ;;  %655 = vmatpush.msra.mxu2 %v633_v10  ;;  %v660_v22 = vld [vmem:[%s510_s3] sm:$0xff]  ;;  %s565_s20 = scalar_lea.vmem [#allocation17], %s2100_s25  ;;  %s1075_s12 = scalar_lea.sflag [#allocation4], %s2097_s16 }
  0x9f   : > { %590 = vmatpush.msra.mxu0 %v567_v6  ;;  %v672_v50 = vld [vmem:[#allocation7] sm:$0xff]  ;;  %s1087_s1 = sshll.u32 %s565_s20, 4  ;;  %s1088_s1 = int_to_ptr.vmem [resolvable:$true] %s1087_s1 }
  0xa0   : > { %1312 = vmatmul.msk.f32.vlgmr.msra.gmra.mxu0 %vm571_vm0, %v566_v7  ;;  %619 = vmatpush.msra.mxu1 %v597_v8 }
  0xa3   : > { %s1085_s26 = scalar_lea.hbm %s2282_s17, %s1332_s30  ;;  %s1758_s25 = scalar_lea.hbm %s2282_s17, 16 }
  0xa4   : > { %s1089_s27 = sshll.u32 %s1085_s26, 4  ;;  %s1090_s27 = int_to_ptr.hbm [resolvable:$true] %s1089_s27 }
  0xa5   : > { %s1752_s22 = sshra.s32 %s1090_s27, 4  ;;  %s1753_s22 = int_to_ptr.hbm [resolvable:$true] %s1752_s22 }
  0xa6   : > { %s1754_s29 = scalar_lea.hbm %s1753_s22, 8  ;;  %p1759_p1 = scmp.lt.s32.totalorder %s1753_s22, %s2282_s17 }
  0xa7   : > { %p1755_p4 = scmp.ne.s32.totalorder %s1753_s22, %s1754_s29  ;;  %p1760_p11 = scmp.lt.s32.totalorder %s1758_s25, %s1754_s29 }
  0xa9   : > { %p1756_p5 = pnand %p1755_p4, %p1966_p3  ;;  %p1761_p2 = por %p1760_p11, %p1759_p1 }
  0xab   : > { %p1757_p7 = pneg %p1756_p5 }
  0xad   : > { %p1762_p10 = pnand %p1761_p2, %p1757_p7 }
 0x11d   : > { %v2129_v11 = vpop.f32.mrf.mxu0 }
 0x11e   : > { %635 = vrot.lane.b32.xlu0 %v2129_v11, %s1828_s15  ;;  %1313 = vmatmul.msk.f32.vlgmr.msra.gmra.mxu1 %vm571_vm0, %v2129_v11  ;;  %v596_v18 = vmul.f32 %v595_v15, %v2129_v11 }
 0x126   : > { %629 = vrot.lane.b32.xlu0 %v627_v12, %s1829_s13 }
 0x12e   : > { %730 = vrot.lane.b32.xlu0 %v2129_v11, %s1830_s18 }
 0x190   : > { %v636_v13 = vpop.permute.xlu0 %635 }
 0x191   : > { %1314 = vmatmul.msk.f32.vlgmr.msra.gmra.mxu2 %vm637_vm1, %v636_v13 }
 0x198   : > { %v630_v14 = vpop.permute.xlu0 %629 }
 0x199   : > { %v632_v25 = vmul.f32 %v630_v14, %v2129_v11  ;;  %v673_v14 = vld [vmem:[#allocation7 + $0x8] sm:$0xff] }
 0x19a   : > { %846 = vmatpush.msrb.mxu1 %v673_v14 }
 0x19b   : > { %v621_v17 = vpop.f32.mrf.mxu1 }
 0x19c   : > { %v625_v19 = vmul.f32 %v624_v16, %v621_v17 }
 0x19e   : > { %v626_v20 = vadd.f32 %v625_v19, %v596_v18 }
 0x1a0   : > { %v731_v21 = vpop.permute.xlu0 %730  ;;  %977 = vrot.lane.b32.xlu0 %v626_v20, %s1831_s5 }
 0x1a1   : > { %751 = vmatpush.msrb.mxu2 %v731_v21  ;;  %823 = vmatpush.msrb.mxu0 %v731_v21 }
 0x1a3   : > { %869 = vmatpush.msra.mxu2 %v672_v50 }
 0x212   : > { %v2162_v39 = vpop.permute.xlu0 %977 }
 0x214   : > { %v657_v23 = vpop.f32.mrf.mxu2 }
 0x215   : > { %v661_v24 = vmul.f32 %v660_v22, %v657_v23 }
 0x217   : > { %663 = vrot.lane.b32.xlu1 %v661_v24, %s1829_s13 }
 0x289   : > { %v664_v26 = vpop.permute.xlu1 %663 }
 0x28a   : > { %v666_v27 = vadd.f32 %v664_v26, %v632_v25 }
 0x28c   : > { %677 = vrot.lane.b32.xlu1 %v666_v27, %s1828_s15 }
 0x294   : > { %756 = vrot.lane.b32.xlu1 %v626_v20, %s1832_s28 }
 0x29c   : > { %874 = vrot.lane.b32.xlu1 %v626_v20, %s1833_s14 }
 0x2fe   : > { %v678_v28 = vpop.permute.xlu1 %677 }
 0x2ff   : > { %1315 = vmatpush.xpose.msk.msra.mxu3 %vm679_vm2, %v678_v28 }
 0x302   : > { %1316 = vmatmul.msk.f32.vlgmr.msra.gmra.mxu3 %vm679_vm2, %v626_v20 }
 0x303   : > { %1318 = vmatpush.xpose.msk.msrb.mxu3 %vm679_vm2, %v678_v28 }
 0x306   : > { %v757_v29 = vpop.permute.xlu1 %756 }
 0x30a   : > { %1319 = vmatmul.msk.f32.vlgmr.msrb.gmra.mxu3 %vm679_vm2, %v757_v29 }
 0x30e   : > { %v875_v57 = vpop.permute.xlu1 %874 }
 0x385   : > { %v702_v33 = vpop.f32.mrf.mxu3 }
 0x386   : > { %v705_v34 = vsel %vm671_vm3, %v702_v33, -inf }
 0x387   : > { %v706_v35 = vsel %vm679_vm2, %v705_v34, -inf }
 0x388   : > { %707 = vmax.xlane.f32.xlu2 %v706_v35 }
 0x38d   : > { %v777_v36 = vpop.f32.mrf.mxu3 }
 0x38e   : > { %v780_v37 = vsel %vm671_vm3, %v777_v36, -inf }
 0x38f   : > { %v781_v38 = vsel %vm679_vm2, %v780_v37, -inf }
 0x390   : > { %782 = vmax.xlane.f32.xlu0 %v781_v38 }
 0x3fb   : > { %v708_v40 = vpop.xlane.xlu2 %707 }
 0x3fc   : > { %v709_v41 = vsub.f32 %v705_v34, %v708_v40 }
 0x3fe   : > { %v710_v42 = vmul.f32 1.442695, %v709_v41 }
 0x400   : > { %1452 = vpow2.f32 %v710_v42 }
 0x403   : > { %v783_v43 = vpop.xlane.xlu0 %782 }
 0x404   : > { %v784_v44 = vsub.f32 %v780_v37, %v783_v43 }
 0x406   : > { %v1453_v45 = vpop.eup %1452  ;;  %v785_v46 = vmul.f32 1.442695, %v784_v44 }
 0x407   : > { %v712_v47 = vsel %vm679_vm2, %v1453_v45, 0.0 }
 0x408   : > { %1454 = vpow2.f32 %v785_v46  ;;  %713 = vadd.xlane.f32.xlu2 %v712_v47  ;;  %v674_v46 = vld [vmem:[#allocation7 + $0x10] sm:$0xff] }
 0x409   : > { %971 = vmatpush.msra.mxu1 %v674_v46 }
 0x40e   : > { %v1455_v48 = vpop.eup %1454 }
 0x40f   : > { %v787_v49 = vsel %vm679_vm2, %v1455_v48, 0.0 }
 0x410   : > { %788 = vadd.xlane.f32.xlu0 %v787_v49 }
 0x420   : > { %876 = vrot.lane.b32.xlu2 %v666_v27, %s1834_s2 }
 0x424   : > { %927 = vrot.lane.b32.xlu0 %v2129_v11, %s1835_s21 }
 0x47b   : > { %v714_v51 = vpop.xlane.xlu2 %713 }
 0x47c   : > { %1456 = vrcp.f32 %v714_v51  ;;  %v726_v58 = vand.u32 2147483648, %v714_v51  ;;  %v724_v60 = vand.u32 2147483647, %v714_v51  ;;  %vm720_vm5 = vweird.f32 %v714_v51 }
 0x47e   : > { %v727_v63 = vor.u32 1.1754944e-38, %v726_v58  ;;  %vm725_vm7 = vcmp.eq.f32.partialorder %v724_v60, 8.507059e+37  ;;  %v675_v60 = vld [vmem:[#allocation7 + $0x18] sm:$0xff] }
 0x482   : > { %v1457_v52 = vpop.eup %1456 }
 0x483   : > { %v716_v53 = vmul.f32 %v1457_v52, %v714_v51  ;;  %v789_v54 = vpop.xlane.xlu0 %788  ;;  %v877_v55 = vpop.permute.xlu2 %876  ;;  %vm721_vm4 = vweird.f32 %v1457_v52 }
 0x484   : > { %1458 = vrcp.f32 %v789_v54  ;;  %1323 = vmatpush.xpose.msk.msra.mxu3 %vm679_vm2, %v877_v55  ;;  %vm722_vm6 = vmor %vm720_vm5, %vm721_vm4  ;;  %v801_v5 = vand.u32 2147483648, %v789_v54  ;;  %v799_v7 = vand.u32 2147483647, %v789_v54  ;;  %vm795_vm9 = vweird.f32 %v789_v54 }
 0x485   : > { %v717_v56 = vsub.f32 1.0, %v716_v53 }
 0x486   : > { %v802_v9 = vor.u32 1.1754944e-38, %v801_v5  ;;  %vm800_vm11 = vcmp.eq.f32.partialorder %v799_v7, 8.507059e+37 }
 0x487   : > { %v718_v59 = vmul.f32 %v1457_v52, %v717_v56  ;;  %1324 = vmatmul.msk.f32.vlgmr.msra.gmra.mxu3 %vm679_vm2, %v875_v57 }
 0x489   : > { %v719_v61 = vadd.f32 %v1457_v52, %v718_v59 }
 0x48a   : > { %v1459_v62 = vpop.eup %1458 }
 0x48b   : > { %v791_v0 = vmul.f32 %v1459_v62, %v789_v54  ;;  %v723_v1 = vsel %vm722_vm6, %v1457_v52, %v719_v61  ;;  %vm796_vm8 = vweird.f32 %v1459_v62 }
 0x48c   : > { %v728_v2 = vsel %vm725_vm7, %v727_v63, %v723_v1  ;;  %vm797_vm10 = vmor %vm795_vm9, %vm796_vm8 }
 0x48d   : > { %v792_v3 = vsub.f32 1.0, %v791_v0  ;;  %v729_v4 = vmul.f32 %v1453_v45, %v728_v2 }
 0x48f   : > { %v793_v6 = vmul.f32 %v1459_v62, %v792_v3  ;;  %1317 = vmatmul.msk.f32.vlgmr.msrb.gmra.mxu2 %vm679_vm2, %v729_v4 }
 0x490   : > { %1327 = vmatpush.xpose.msk.msrb.mxu2 %vm679_vm2, %v877_v55 }
 0x491   : > { %v794_v8 = vadd.f32 %v1459_v62, %v793_v6 }
 0x493   : > { %v798_v10 = vsel %vm797_vm10, %v1459_v62, %v794_v8 }
 0x494   : > { %v803_v11 = vsel %vm800_vm11, %v802_v9, %v798_v10 }
 0x495   : > { %v804_v12 = vmul.f32 %v1455_v48, %v803_v11 }
 0x496   : > { %v928_v13 = vpop.permute.xlu0 %927 }
 0x497   : > { %1320 = vmatmul.msk.f32.vlgmr.msrb.gmra.mxu0 %vm679_vm2, %v804_v12  ;;  %1044 = vmatpush.msrb.mxu3 %v928_v13 }
 0x498   : > { %948 = vmatpush.msra.mxu0 %v928_v13 }
 0x49a   : > { %1067 = vmatpush.msrb.mxu0 %v675_v60 }
 0x50a   : > { %v899_v15 = vpop.f32.mrf.mxu3 }
 0x50b   : > { %v902_v16 = vsel %vm671_vm3, %v899_v15, -inf }
 0x50c   : > { %v903_v17 = vsel %vm679_vm2, %v902_v16, -inf }
 0x50d   : > { %904 = vmax.xlane.f32.xlu2 %v903_v17 }
 0x512   : > { %v753_v18 = vpop.f32.mrf.mxu2 }
 0x513   : > { %1322 = vmatmul.msk.f32.vlgmr.msra.gmra.mxu2 %vm679_vm2, %v753_v18 }
 0x514   : > { %v825_v19 = vpop.f32.mrf.mxu0 }
 0x515   : > { %1321 = vmatmul.msk.f32.vlgmr.msrb.gmra.mxu1 %vm679_vm2, %v825_v19 }
 0x51b   : > { %1328 = vmatmul.msk.f32.vlgmr.msrb.gmra.mxu2 %vm679_vm2, %v2162_v39 }
 0x580   : > { %v905_v20 = vpop.xlane.xlu2 %904 }
 0x581   : > { %v906_v21 = vsub.f32 %v902_v16, %v905_v20 }
 0x583   : > { %v907_v22 = vmul.f32 1.442695, %v906_v21 }
 0x585   : > { %1460 = vpow2.f32 %v907_v22 }
 0x58b   : > { %v1461_v23 = vpop.eup %1460 }
 0x58c   : > { %v909_v24 = vsel %vm679_vm2, %v1461_v23, 0.0 }
 0x58d   : > { %910 = vadd.xlane.f32.xlu2 %v909_v24 }
 0x592   : > { %v848_v62 = vpop.f32.mrf.mxu1 }
 0x596   : > { %v871_v25 = vpop.f32.mrf.mxu2 }
 0x597   : > { %v872_v0 = vadd.f32 %v871_v25, %v848_v62 }
 0x59e   : > { %v998_v26 = vpop.f32.mrf.mxu2 }
 0x59f   : > { %v1001_v27 = vsel %vm671_vm3, %v998_v26, -inf }
 0x5a0   : > { %v1002_v28 = vsel %vm679_vm2, %v1001_v27, -inf }
 0x5a1   : > { %1003 = vmax.xlane.f32.xlu1 %v1002_v28 }
 0x600   : > { %v911_v29 = vpop.xlane.xlu2 %910 }
 0x601   : > { %1462 = vrcp.f32 %v911_v29  ;;  %v923_v35 = vand.u32 2147483648, %v911_v29  ;;  %v921_v37 = vand.u32 2147483647, %v911_v29  ;;  %vm917_vm13 = vweird.f32 %v911_v29 }
 0x603   : > { %v924_v39 = vor.u32 1.1754944e-38, %v923_v35  ;;  %vm922_vm15 = vcmp.eq.f32.partialorder %v921_v37, 8.507059e+37 }
 0x607   : > { %v1463_v30 = vpop.eup %1462 }
 0x608   : > { %v913_v33 = vmul.f32 %v1463_v30, %v911_v29  ;;  %vm918_vm12 = vweird.f32 %v1463_v30 }
 0x609   : > { %vm919_vm14 = vmor %vm917_vm13, %vm918_vm12 }
 0x60a   : > { %v914_v34 = vsub.f32 1.0, %v913_v33 }
 0x60c   : > { %v915_v36 = vmul.f32 %v1463_v30, %v914_v34 }
 0x60e   : > { %v916_v38 = vadd.f32 %v1463_v30, %v915_v36 }
 0x610   : > { %v920_v40 = vsel %vm919_vm14, %v1463_v30, %v916_v38 }
 0x611   : > { %v925_v31 = vsel %vm922_vm15, %v924_v39, %v920_v40 }
 0x612   : > { %v926_v32 = vmul.f32 %v1461_v23, %v925_v31 }
 0x614   : > { %v1004_v41 = vpop.xlane.xlu1 %1003  ;;  %1325 = vmatmul.msk.f32.vlgmr.msra.gmra.mxu0 %vm679_vm2, %v926_v32 }
 0x615   : > { %v1005_v42 = vsub.f32 %v1001_v27, %v1004_v41 }
 0x617   : > { %v1006_v43 = vmul.f32 1.442695, %v1005_v42 }
 0x619   : > { %1464 = vpow2.f32 %v1006_v43 }
 0x61f   : > { %v1465_v44 = vpop.eup %1464 }
 0x620   : > { %v1008_v45 = vsel %vm679_vm2, %v1465_v44, 0.0 }
 0x621   : > { %1009 = vadd.xlane.f32.xlu1 %v1008_v45 }
 0x691   : > { %v950_v47 = vpop.f32.mrf.mxu0 }
 0x692   : > { %1326 = vmatmul.msk.f32.vlgmr.msra.gmra.mxu1 %vm679_vm2, %v950_v47 }
 0x694   : > { %v1010_v48 = vpop.xlane.xlu1 %1009 }
 0x695   : > { %1466 = vrcp.f32 %v1010_v48  ;;  %v1022_v52 = vand.u32 2147483648, %v1010_v48  ;;  %v1020_v54 = vand.u32 2147483647, %v1010_v48  ;;  %vm1016_vm3 = vweird.f32 %v1010_v48 }
 0x697   : > { %v1023_v56 = vor.u32 1.1754944e-38, %v1022_v52  ;;  %vm1021_vm5 = vcmp.eq.f32.partialorder %v1020_v54, 8.507059e+37 }
 0x69b   : > { %v1467_v49 = vpop.eup %1466 }
 0x69c   : > { %v1012_v50 = vmul.f32 %v1467_v49, %v1010_v48  ;;  %vm1017_vm1 = vweird.f32 %v1467_v49 }
 0x69d   : > { %vm1018_vm4 = vmor %vm1016_vm3, %vm1017_vm1 }
 0x69e   : > { %v1013_v51 = vsub.f32 1.0, %v1012_v50 }
 0x6a0   : > { %v1014_v53 = vmul.f32 %v1467_v49, %v1013_v51 }
 0x6a2   : > { %v1015_v55 = vadd.f32 %v1467_v49, %v1014_v53 }
 0x6a4   : > { %v1019_v57 = vsel %vm1018_vm4, %v1467_v49, %v1015_v55 }
 0x6a5   : > { %v1024_v58 = vsel %vm1021_vm5, %v1023_v56, %v1019_v57 }
 0x6a6   : > { %v1025_v59 = vmul.f32 %v1465_v44, %v1024_v58 }
 0x6a8   : > { %1329 = vmatmul.msk.f32.vlgmr.msrb.gmra.mxu3 %vm679_vm2, %v1025_v59 }
 0x70f   : > { %v973_v63 = vpop.f32.mrf.mxu1 }
 0x710   : > { %v976_v1 = vadd.f32 %v973_v63, %v872_v0 }
 0x72b   : > { %v1046_v61 = vpop.f32.mrf.mxu3 }
 0x72c   : > { %1330 = vmatmul.msk.f32.vlgmr.msrb.gmra.mxu0 %vm679_vm2, %v1046_v61 }
 0x7a9   : > { %v1069_v2 = vpop.f32.mrf.mxu0 }
 0x7aa   : > { %v1072_v3 = vadd.f32 %v1069_v2, %v976_v1 }
 0x7ac   : > { %1073 = vst.msk [vmem:[%s565_s20] sm:$0xff] %vm571_vm0, %v1072_v3 }
 0x7ad   : > { %1765 = shalt.err (!%p1762_p10)
}
 0x7ae   : > { %1361 = dma.vmem_to_hbm [thread:$0]  (%p1966_p3), %s1088_s1, 128, %s1090_s27, %s1075_s12  }
 0x7af PF: > { %s2284_s16 = sld [smem:[#allocation24_spill]] }
 0x7b0   : > { %s2286_s3 = sld [smem:[#allocation25_spill]] }
 0x7b5   : > { %s1101_s28 = sand.u32 1, %s2284_s16  }
 0x7b6   : > { %p2287_p13 = scmp.ge.s32.totalorder %s2286_s3, 2  ;;  %s1102_s14 = scalar_lea.sflag [#allocation4], %s1101_s28 }
 0x7b8   : > { %p1393_p9 = pnand %p2287_p13, %p1921_p6 }
 0x7ba   : > { %p1394_p8 = pneg %p1393_p9 }
 0x7bc   : > { %1803 = dma.done.wait (%p1394_p8), %s1102_s14, 128  }
 0x7bd   : > { %1805 = vsyncadd (%p1394_p8), %s1102_s14, 4294967168  ;;  %s2288_s12 = sld [smem:[#allocation28_spill]]  ;;  %s2290_s30 = smov %s1812_s10 }
 0x7be   : > { %s2289_s2 = sld [smem:[#allocation30_spill]]  ;;  %s2291_s10 = smov %s1816_s11 }
 0x7c3   : > { %p30_p12 = scmp.ge.s32.totalorder %s2288_s12, 4  }
 0x7c4   : > { %s2292_s11 = smov %s2289_s2 }
 0x7c5   :  { %32 = sbr.rel (!%p30_p12) target bundleno = 17 (0x11), region = 165 }
 0x7ca   :  { %1108 = vsyncpa [#allocation3], 1 }
 0x7cb   :  { %1110 = vsyncpa [#allocation3 + $0x1], 1 }
 0x7cc   :  { %1111 = vsyncpa [#allocation6], 1 }
 0x7cd   :  { %1112 = vsyncpa [#allocation9], 1 }
 0x7ce   :  { %1113 = vsyncpa [#allocation12], 1 }
 0x7cf   :  { %1115 = vsyncpa [#allocation12 + $0x1], 1 }
 0x7d0   :  { %1116 = vsyncpa [#allocation15], 1 }
 0x7d1   :  { %1118 = vsyncpa [#allocation15 + $0x1], 1 }
 0x7d2   :  { %1119 = vsyncpa [#allocation4], 1 }
 0x7d3   :  { %1121 = vsyncpa [#allocation4 + $0x1], 1 }

</bundles_post_ra>
